<compile_context>
chip_gen: v7x
topology: tpu7x:2x2x1
jax: 0.10.0
libtpu: 0.0.40
codegen_flags: <defaults>
</compile_context>

<pallas_src>
import functools

import jax
import jax.numpy as jnp
import numpy as np
from jax.experimental import pallas as pl
from jax.experimental.pallas import tpu as pltpu

_VMEM = pl.BlockSpec(memory_space=pltpu.MemorySpace.VMEM)


def _round_up(x, m):
    return (x + m - 1) // m * m


def _pick_tile(d, cands):
    for c in cands:
        if d % c == 0:
            return c
    return d


# ----------------------------------------------------------------------------
# Fused conv-as-matmul + BN + (ReLU) kernel: tiled, pipelined, bf16 operands.
# ----------------------------------------------------------------------------
def _matmul_bn_act_kernel(x_ref, w_ref, scale_ref, shift_ref, o_ref, acc_ref, *, act):
    @pl.when(pl.program_id(2) == 0)
    def _init():
        acc_ref[...] = jnp.zeros_like(acc_ref)

    acc_ref[...] += jnp.dot(x_ref[...], w_ref[...],
                            preferred_element_type=jnp.float32)

    @pl.when(pl.program_id(2) == pl.num_programs(2) - 1)
    def _finish():
        y = acc_ref[...] * scale_ref[...] + shift_ref[...]
        if act == "relu":
            y = jnp.maximum(y, 0.0)
        o_ref[...] = y


def matmul_bn_act(x, w, scale, shift, act="none"):
    """(M, K) @ (K, N) fused with per-channel scale/shift (+ReLU). f32 in/out."""
    M, K = x.shape
    N = w.shape[1]
    Mp, Kp, Np = _round_up(M, 128), _round_up(K, 128), _round_up(N, 128)
    tm = _pick_tile(Mp, (512, 256, 128))
    tk = _pick_tile(Kp, (512, 256, 128))
    tn = _pick_tile(Np, (256, 128))

    # Pad to lane/sublane friendly shapes; bf16 operands, f32 epilogue params.
    xp = jnp.pad(x, ((0, Mp - M), (0, Kp - K))).astype(jnp.bfloat16)
    wp = jnp.pad(w, ((0, Kp - K), (0, Np - N))).astype(jnp.bfloat16)
    sp = jnp.pad(scale.astype(jnp.float32), (0, Np - N)).reshape(1, Np)
    shp = jnp.pad(shift.astype(jnp.float32), (0, Np - N)).reshape(1, Np)

    kern = functools.partial(_matmul_bn_act_kernel, act=act)
    out = pl.pallas_call(
        kern,
        out_shape=jax.ShapeDtypeStruct((Mp, Np), jnp.float32),
        grid_spec=pltpu.PrefetchScalarGridSpec(
            num_scalar_prefetch=0,
            grid=(Mp // tm, Np // tn, Kp // tk),
            in_specs=[
                pl.BlockSpec((tm, tk), lambda i, j, k: (i, k)),
                pl.BlockSpec((tk, tn), lambda i, j, k: (k, j)),   # indep. of i
                pl.BlockSpec((1, tn), lambda i, j, k: (0, j)),
                pl.BlockSpec((1, tn), lambda i, j, k: (0, j)),
            ],
            out_specs=pl.BlockSpec((tm, tn), lambda i, j, k: (i, j)),
            scratch_shapes=[pltpu.VMEM((tm, tn), jnp.float32)],
        ),
        compiler_params=pltpu.CompilerParams(
            dimension_semantics=("parallel", "parallel", "arbitrary"),
            vmem_limit_bytes=32 * 1024 * 1024,
        ),
    )(xp, wp, sp, shp)
    return out[:M, :N]


# ----------------------------------------------------------------------------
# SimAM attention + residual add + ReLU (NHWC, lane-dense channels).
# ----------------------------------------------------------------------------
def _simam_add_relu_kernel(x_ref, r_ref, o_ref, *, inv_n):
    x = x_ref[...]                                   # (1, H*W, C)
    mu = jnp.mean(x, axis=1, keepdims=True)
    d = (x - mu) ** 2
    v = jnp.sum(d, axis=1, keepdims=True) * inv_n
    e_inv = d * pl.reciprocal(4.0 * (v + 1e-4), approx=True) + 0.5
    y = x * jax.nn.sigmoid(e_inv)
    o_ref[...] = jnp.maximum(y + r_ref[...], 0.0)


def simam_add_relu(x, res):
    """x, res: NHWC (B, H, W, C). Returns relu(SimAM(x) + res), NHWC."""
    B, H, W, C = x.shape
    hw = H * W
    kern = functools.partial(_simam_add_relu_kernel,
                             inv_n=1.0 / float(max(hw - 1, 1)))
    y = pl.pallas_call(
        kern,
        out_shape=jax.ShapeDtypeStruct((B, hw, C), jnp.float32),
        grid_spec=pltpu.PrefetchScalarGridSpec(
            num_scalar_prefetch=0,
            grid=(B,),
            in_specs=[pl.BlockSpec((1, hw, C), lambda b: (b, 0, 0)),
                      pl.BlockSpec((1, hw, C), lambda b: (b, 0, 0))],
            out_specs=pl.BlockSpec((1, hw, C), lambda b: (b, 0, 0)),
        ),
        compiler_params=pltpu.CompilerParams(dimension_semantics=("parallel",)),
    )(x.reshape(B, hw, C), res.reshape(B, hw, C))
    return y.reshape(B, H, W, C)


# ----------------------------------------------------------------------------
# SAP attentive pooling + final fc, fully batched in one kernel.
#   x: (B, T, F) time-major, F = C*H (matches torch X.reshape(b, -1, w)).
# ----------------------------------------------------------------------------
def _sap_fc_kernel(x_ref, w1_ref, b1_ref, s1_ref, sh1_ref, w2_ref, b2_ref,
                   fcw_ref, fcb_ref, o_ref):
    x = x_ref[...]                                   # (B, T, F) f32
    B, T, F = x.shape
    dim = w1_ref.shape[1]

    w1b = jnp.broadcast_to(w1_ref[...][None], (B, F, dim))
    h = jnp.einsum("btf,bfd->btd", x, w1b, preferred_element_type=jnp.float32)
    h = h + b1_ref[...]
    h = jnp.maximum(h, 0.0)                          # ReLU
    h = h * s1_ref[...] + sh1_ref[...]               # BatchNorm1d (eval, folded)

    w2b = jnp.broadcast_to(w2_ref[...][None], (B, dim, F))
    s = jnp.einsum("btd,bdf->btf", h, w2b, preferred_element_type=jnp.float32)
    s = s + b2_ref[...]

    s = s - jnp.max(s, axis=1, keepdims=True)        # softmax over time (dim=2 in torch)
    e = jnp.exp(s)
    att = e * pl.reciprocal(jnp.sum(e, axis=1, keepdims=True), approx=True)
    pooled = jnp.sum(att * x, axis=1)                # (B, F)

    o_ref[...] = jnp.dot(pooled, fcw_ref[...],
                         preferred_element_type=jnp.float32) + fcb_ref[...]


def sap_fc_forward(x, p, fc_w, fc_b):
    B, T, F = x.shape
    dim = p["w1"].shape[1]
    E = fc_w.shape[0]
    return pl.pallas_call(
        _sap_fc_kernel,
        out_shape=jax.ShapeDtypeStruct((B, E), jnp.float32),
        in_specs=[_VMEM] * 9,
        out_specs=_VMEM,
    )(
        x,
        p["w1"],                              # (F, dim)   = Conv1d(F->dim).weight^T
        p["b1"].reshape(1, 1, dim),
        p["bn_scale"].reshape(1, 1, dim),
        p["bn_shift"].reshape(1, 1, dim),
        p["w2"],                              # (dim, F)   = Conv1d(dim->F).weight^T
        p["b2"].reshape(1, 1, F),
        fc_w.T,                               # (F, E)
        fc_b.reshape(1, E),
    )


# ----------------------------------------------------------------------------
# Plain-JAX glue (NHWC im2col — no transposes around the Pallas calls)
# ----------------------------------------------------------------------------
def _im2col_nhwc(x, ksize, stride, pad):
    B, H, W, C = x.shape
    xp = jnp.pad(x, ((0, 0), (pad, pad), (pad, pad), (0, 0)))
    Ho = (H + 2 * pad - ksize) // stride + 1
    Wo = (W + 2 * pad - ksize) // stride + 1
    cols = []
    for i in range(ksize):
        for j in range(ksize):
            cols.append(xp[:, i:i + stride * Ho:stride, j:j + stride * Wo:stride, :])
    patches = jnp.stack(cols, axis=-1)               # (B, Ho, Wo, C, k*k)  (c-major)
    patches = patches.reshape(B * Ho * Wo, C * ksize * ksize)
    return patches, Ho, Wo


def conv2d_bn_act(x, w, scale, shift, stride, act):
    """x: NHWC. w: PyTorch layout (Cout, Cin, kh, kw). Returns NHWC."""
    B, H, W, C = x.shape
    Cout, Cin, kh, kw = w.shape
    if kh == 1:                                      # 1x1 downsample conv
        xs = x[:, ::stride, ::stride, :]
        Ho, Wo = xs.shape[1], xs.shape[2]
        patches = xs.reshape(B * Ho * Wo, Cin)
        wm = w.reshape(Cout, Cin).T
    else:                                            # 3x3 conv, padding 1
        patches, Ho, Wo = _im2col_nhwc(x, kh, stride, 1)
        wm = w.reshape(Cout, Cin * kh * kw).T
    y = matmul_bn_act(patches, wm, scale, shift, act)
    return y.reshape(B, Ho, Wo, Cout)


# ----------------------------------------------------------------------------
# Parameters (deterministic synthetic init)
# ----------------------------------------------------------------------------
class KeyGen:
    def __init__(self, seed):
        self.key = jax.random.PRNGKey(seed)

    def __call__(self):
        self.key, k = jax.random.split(self.key)
        return k


def _conv_init(kg, cout, cin, k):
    fan_in = cin * k * k
    return jax.random.normal(kg(), (cout, cin, k, k), jnp.float32) / np.sqrt(fan_in)


def _bn_init(kg, c, eps=1e-5):
    gamma = 1.0 + 0.1 * jax.random.normal(kg(), (c,), jnp.float32)
    beta = 0.1 * jax.random.normal(kg(), (c,), jnp.float32)
    running_mean = jnp.zeros((c,), jnp.float32)
    running_var = jnp.ones((c,), jnp.float32)
    scale = gamma / jnp.sqrt(running_var + eps)
    shift = beta - running_mean * scale
    return scale, shift


def _block_init(kg, cin, planes, stride):
    p = {
        "conv1_w": _conv_init(kg, planes, cin, 3),
        "bn1": _bn_init(kg, planes),
        "conv2_w": _conv_init(kg, planes, planes, 3),
        "bn2": _bn_init(kg, planes),
        "stride": stride,
    }
    if stride != 1 or cin != planes:
        p["down_w"] = _conv_init(kg, planes, cin, 1)
        p["dbn"] = _bn_init(kg, planes)
    return p


def init_params(seed=1, in_planes=4, num_blocks=(1, 1, 1, 1), in_ch=1, encoded_dim=32):
    kg = KeyGen(seed)
    params = {
        "conv1_w": _conv_init(kg, in_planes, in_ch, 3),
        "bn1": _bn_init(kg, in_planes),
    }
    cin = in_planes
    layers = []
    for mult, nblk, stride0 in zip((1, 2, 4, 8), num_blocks, (1, 2, 2, 2)):
        planes = in_planes * mult
        blocks = []
        for bi in range(nblk):
            stride = stride0 if bi == 0 else 1
            blocks.append(_block_init(kg, cin, planes, stride))
            cin = planes
        layers.append(blocks)
    params["layers"] = layers

    sap_out, dim = 64, 128
    bn_s, bn_sh = _bn_init(kg, dim)
    params["sap"] = {
        "w1": jax.random.normal(kg(), (sap_out, dim), jnp.float32) / np.sqrt(sap_out),
        "b1": 0.1 * jax.random.normal(kg(), (dim,), jnp.float32),
        "bn_scale": bn_s,
        "bn_shift": bn_sh,
        "w2": jax.random.normal(kg(), (dim, sap_out), jnp.float32) / np.sqrt(dim),
        "b2": 0.1 * jax.random.normal(kg(), (sap_out,), jnp.float32),
    }
    params["fc_w"] = jax.random.normal(kg(), (encoded_dim, sap_out), jnp.float32) / np.sqrt(sap_out)
    params["fc_b"] = 0.1 * jax.random.normal(kg(), (encoded_dim,), jnp.float32)
    return params


# ----------------------------------------------------------------------------
# Forward pass
# ----------------------------------------------------------------------------
def block_forward(x, p):
    # SimAMBasicBlock: relu(bn1(conv1)) -> SimAM(bn2(conv2)) + shortcut -> relu
    out = conv2d_bn_act(x, p["conv1_w"], *p["bn1"], stride=p["stride"], act="relu")
    out = conv2d_bn_act(out, p["conv2_w"], *p["bn2"], stride=1, act="none")
    if "down_w" in p:
        res = conv2d_bn_act(x, p["down_w"], *p["dbn"], stride=p["stride"], act="none")
    else:
        res = x
    return simam_add_relu(out, res)


def resnet_forward(params, x):
    # x: (B, H, W) -> unsqueeze(dim=1) in torch; here NHWC with C=1.
    x = x[..., None]                                 # (B, H, W, 1)
    x = conv2d_bn_act(x, params["conv1_w"], *params["bn1"], stride=1, act="relu")
    for blocks in params["layers"]:
        for p in blocks:
            x = block_forward(x, p)
    # SAP input: torch does X.reshape(b, c*h, w) on NCHW (feature idx = c*H + h,
    # W is time).  From NHWC: (B,H,W,C) -> (B,W,C,H) -> (B, T=W, F=C*H).
    B, H, W, C = x.shape
    x_sap = jnp.transpose(x, (0, 2, 3, 1)).reshape(B, W, C * H)
    return sap_fc_forward(x_sap, params["sap"], params["fc_w"], params["fc_b"])


# ----------------------------------------------------------------------------
# Main
# ----------------------------------------------------------------------------
if __name__ == "__main__":
    # Small config: in_planes=4, num_blocks=(1,1,1,1), encoded_dim=32.
    # Input (B=2, H=16, W=16): after layer4 -> NHWC (2, 2, 2, 32); C*H = 64 matches
    # the SAP out_size of 64 hard-coded in the reference module.
    params = init_params(seed=1, in_planes=4, num_blocks=(1, 1, 1, 1),
                         in_ch=1, encoded_dim=32)
    x = jax.random.normal(jax.random.PRNGKey(0), (2, 16, 16), jnp.float32)

    out = resnet_forward(params, x)
    out = jax.block_until_ready(out)

    assert out.shape == (2, 32), out.shape
    assert bool(jnp.all(jnp.isfinite(out)))
    print("KERNEL_OK")
</pallas_src>

<mosaic_0001>
module attributes {stable_mosaic.version = 11 : i64} {
  func.func @_matmul_bn_act_kernel(%arg0: i32, %arg1: i32, %arg2: i32, %arg3: memref<512x128xbf16, #tpu.memory_space<vmem>>, %arg4: memref<128x128xbf16, #tpu.memory_space<vmem>>, %arg5: memref<1x128xf32, #tpu.memory_space<vmem>>, %arg6: memref<1x128xf32, #tpu.memory_space<vmem>>, %arg7: memref<512x128xf32, #tpu.memory_space<vmem>>, %arg8: memref<512x128xf32, #tpu.memory_space<vmem>>) attributes {dimension_semantics = [#tpu.dimension_semantics<parallel>, #tpu.dimension_semantics<parallel>, #tpu.dimension_semantics<arbitrary>], iteration_bounds = array<i64: 1, 1, 1>, scalar_prefetch = 0 : i64, scratch_operands = 1 : i64, tpu.core_type = #tpu.core_type<tc>, window_params = [{transform_indices = @transform_0, window_bounds = array<i64: 512, 128>}, {transform_indices = @transform_1, window_bounds = array<i64: 128, 128>}, {transform_indices = @transform_2, window_bounds = array<i64: 1, 128>}, {transform_indices = @transform_3, window_bounds = array<i64: 1, 128>}, {transform_indices = @transform_4, window_bounds = array<i64: 512, 128>}]} {
    %c0_i32 = arith.constant 0 : i32
    %0 = arith.cmpi eq, %arg2, %c0_i32 : i32
    %1 = arith.extui %0 : i1 to i32
    %c0_i32_0 = arith.constant 0 : i32
    %2 = arith.cmpi ne, %1, %c0_i32_0 : i32
    scf.if %2 {
      %cst_10 = arith.constant 0.000000e+00 : f32
      %12 = vector.broadcast %cst_10 : f32 to vector<512x128xf32>
      %c0_11 = arith.constant 0 : index
      %c0_12 = arith.constant 0 : index
      %13 = vector.load %arg8[%c0_11, %c0_12] : memref<512x128xf32, #tpu.memory_space<vmem>>, vector<512x128xf32>
      tpu.vector_store %arg8[%c0_11, %c0_12], %12 {strides = array<i32>} : memref<512x128xf32, #tpu.memory_space<vmem>>, vector<512x128xf32>,
    } else {
    }
    %c0 = arith.constant 0 : index
    %c0_1 = arith.constant 0 : index
    %3 = vector.load %arg8[%c0, %c0_1] : memref<512x128xf32, #tpu.memory_space<vmem>>, vector<512x128xf32>
    %c0_2 = arith.constant 0 : index
    %c0_3 = arith.constant 0 : index
    %4 = vector.load %arg3[%c0_2, %c0_3] : memref<512x128xbf16, #tpu.memory_space<vmem>>, vector<512x128xbf16>
    %c0_4 = arith.constant 0 : index
    %c0_5 = arith.constant 0 : index
    %5 = vector.load %arg4[%c0_4, %c0_5] : memref<128x128xbf16, #tpu.memory_space<vmem>>, vector<128x128xbf16>
    %cst = arith.constant dense<0.000000e+00> : vector<512x128xf32>
    %6 = tpu.matmul %4, %5, %cst {dimension_numbers = #tpu.dot_dimension_numbers<[1], [0], [0], [1], [0, 0, 1, 1], [], []>} : vector<512x128xbf16>, vector<128x128xbf16>, vector<512x128xf32> -> vector<512x128xf32>
    %7 = arith.addf %3, %6 : vector<512x128xf32>
    %c0_6 = arith.constant 0 : index
    %c0_7 = arith.constant 0 : index
    %8 = vector.load %arg8[%c0_6, %c0_7] : memref<512x128xf32, #tpu.memory_space<vmem>>, vector<512x128xf32>
    tpu.vector_store %arg8[%c0_6, %c0_7], %7 {strides = array<i32>} : memref<512x128xf32, #tpu.memory_space<vmem>>, vector<512x128xf32>,
    %c0_i32_8 = arith.constant 0 : i32
    %9 = arith.cmpi eq, %arg2, %c0_i32_8 : i32
    %10 = arith.extui %9 : i1 to i32
    %c0_i32_9 = arith.constant 0 : i32
    %11 = arith.cmpi ne, %10, %c0_i32_9 : i32
    scf.if %11 {
      %c0_10 = arith.constant 0 : index
      %c0_11 = arith.constant 0 : index
      %12 = vector.load %arg8[%c0_10, %c0_11] : memref<512x128xf32, #tpu.memory_space<vmem>>, vector<512x128xf32>
      %c0_12 = arith.constant 0 : index
      %c0_13 = arith.constant 0 : index
      %13 = vector.load %arg5[%c0_12, %c0_13] : memref<1x128xf32, #tpu.memory_space<vmem>>, vector<1x128xf32>
      %14 = vector.broadcast %13 : vector<1x128xf32> to vector<512x128xf32>
      %15 = arith.mulf %12, %14 : vector<512x128xf32>
      %c0_14 = arith.constant 0 : index
      %c0_15 = arith.constant 0 : index
      %16 = vector.load %arg6[%c0_14, %c0_15] : memref<1x128xf32, #tpu.memory_space<vmem>>, vector<1x128xf32>
      %17 = vector.broadcast %16 : vector<1x128xf32> to vector<512x128xf32>
      %18 = arith.addf %15, %17 : vector<512x128xf32>
      %cst_16 = arith.constant 0.000000e+00 : f32
      %19 = vector.broadcast %cst_16 : f32 to vector<512x128xf32>
      %20 = arith.maximumf %18, %19 : vector<512x128xf32>
      %c0_17 = arith.constant 0 : index
      %c0_18 = arith.constant 0 : index
      %21 = vector.load %arg7[%c0_17, %c0_18] : memref<512x128xf32, #tpu.memory_space<vmem>>, vector<512x128xf32>
      tpu.vector_store %arg7[%c0_17, %c0_18], %20 {strides = array<i32>} : memref<512x128xf32, #tpu.memory_space<vmem>>, vector<512x128xf32>,
    } else {
    }
    return
  }
  func.func @transform_0(%arg0: i32, %arg1: i32, %arg2: i32) -> (i32, i32) {
    %c0_i32 = arith.constant 0 : i32
    return %arg0, %arg2 : i32, i32
  }
  func.func @transform_1(%arg0: i32, %arg1: i32, %arg2: i32) -> (i32, i32) {
    %c0_i32 = arith.constant 0 : i32
    return %arg2, %arg1 : i32, i32
  }
  func.func @transform_2(%arg0: i32, %arg1: i32, %arg2: i32) -> (i32, i32) {
    %c0_i32 = arith.constant 0 : i32
    %c0_i32_0 = arith.constant 0 : i32
    return %c0_i32, %arg1 : i32, i32
  }
  func.func @transform_3(%arg0: i32, %arg1: i32, %arg2: i32) -> (i32, i32) {
    %c0_i32 = arith.constant 0 : i32
    %c0_i32_0 = arith.constant 0 : i32
    return %c0_i32, %arg1 : i32, i32
  }
  func.func @transform_4(%arg0: i32, %arg1: i32, %arg2: i32) -> (i32, i32) {
    %c0_i32 = arith.constant 0 : i32
    return %arg0, %arg1 : i32, i32
  }
}

</mosaic_0001>

<bundles_post_ra>
// kernel: tpu_custom_call.1
= control target key start
LH: loop header
LB: loop body
LE: loop exit
PB: predicated region body
PF: predicated region fallthrough
CT: control target
= control target key end

     0   :  { %9 = vsyncpa [#allocation4], 0  ;;  %s1774_s0 = inlined_call_operand.hbm [shape: bf16[512,128], index: 0, kind: input, shape index: {}]   ;;  %s1775_s1 = inlined_call_operand.hbm [shape: bf16[128,128], index: 1, kind: input, shape index: {}]   ;;  %s1776_s2 = inlined_call_operand.vmem [shape: f32[1,128], index: 2, kind: input, shape index: {}]   ;;  %s1777_s3 = inlined_call_operand.vmem [shape: f32[1,128], index: 3, kind: input, shape index: {}]   ;;  %s1778_s4 = inlined_call_operand.hbm [shape: f32[512,128], index: 4, kind: output, shape index: {}]  }
   0x1   :  { %10 = vsyncpa [#allocation7], 0 }
   0x2   :  { %11 = vsyncpa [#allocation5], 0  ;;  %s1568_s15 = smov [#allocation3]   ;;  %s1496_s19 = scalar_lea.hbm %s1774_s0, 4096 }
   0x3   :  { %s17_s16 = sshll.u32 %s1568_s15, 4  ;;  %p1497_p0 = scmp.ne.s32.totalorder %s1774_s0, %s1496_s19  ;;  %s18_s16 = int_to_ptr.vmem [resolvable:$true] %s17_s16 }
   0x4   :  { %p1500_p1 = scmp.lt.u32.totalorder %s1496_s19, %s1774_s0 }
   0x6   :  { %p1502_p2 = pnand %p1500_p1, %p1497_p0 }
   0x8   :  { %1505 = shalt.err (!%p1502_p2)
}
   0x9   :  { %s1506_s24 = scalar_lea.vmem %s18_s16, 4096  ;;  %p1511_p4 = scmp.lt.s32.totalorder %s18_s16, %s18_s16 }
   0xa   :  { %p1507_p3 = scmp.ne.s32.totalorder %s18_s16, %s1506_s24  ;;  %p1512_p5 = scmp.lt.s32.totalorder %s1506_s24, %s1506_s24 }
   0xc   :  { %p1513_p6 = por %p1512_p5, %p1511_p4 }
   0xe   :  { %p1514_p7 = pnand %p1513_p6, %p1507_p3 }
  0x10   :  { %1517 = shalt.err (!%p1514_p7)
}
  0x11   :  { %s1569_s25 = smov 64   ;;  %s1570_s26 = smov 4  }
  0x12   :  { %23 = dma.hbm_to_vmem [thread:$0]  %s1774_s0, 4096, %s18_s16, [#allocation4], %s1569_s25, %s1569_s25, %s1570_s26  }
  0x13   :  { %s1571_s29 = smov [#allocation6]   ;;  %s1518_s7 = scalar_lea.hbm %s1775_s1, 1024 }
  0x14   :  { %s29_s30 = sshll.u32 %s1571_s29, 4  ;;  %p1519_p8 = scmp.ne.s32.totalorder %s1775_s1, %s1518_s7  ;;  %s30_s30 = int_to_ptr.vmem [resolvable:$true] %s29_s30 }
  0x15   :  { %p1522_p9 = scmp.lt.u32.totalorder %s1518_s7, %s1775_s1 }
  0x17   :  { %p1524_p10 = pnand %p1522_p9, %p1519_p8 }
  0x19   :  { %1527 = shalt.err (!%p1524_p10)
}
  0x1a   :  { %s1528_s12 = scalar_lea.vmem %s30_s30, 1024  ;;  %p1533_p12 = scmp.lt.s32.totalorder %s30_s30, %s30_s30 }
  0x1b   :  { %p1529_p11 = scmp.ne.s32.totalorder %s30_s30, %s1528_s12  ;;  %p1534_p13 = scmp.lt.s32.totalorder %s1528_s12, %s1528_s12 }
  0x1d   :  { %p1535_p0 = por %p1534_p13, %p1533_p12 }
  0x1f   :  { %p1536_p1 = pnand %p1535_p0, %p1529_p11 }
  0x21   :  { %1539 = shalt.err (!%p1536_p1)
}
  0x22   :  { %35 = dma.hbm_to_vmem [thread:$0]  %s1775_s1, 1024, %s30_s30, [#allocation7], %s1569_s25, %s1569_s25, %s1570_s26  }
  0x23   :  { %1562 = dma.done.wait [#allocation4], 4096  }
  0x24   :  { %1563 = vsyncadd [#allocation4], 4294963200 }
  0x25   :  { %1564 = dma.done.wait [#allocation7], 1024  }
  0x26   :  { %1565 = vsyncadd [#allocation7], 4294966272  ;;  %v1456_v0 = vld [vmem:[#allocation6] sm:$0xff]   ;;  %v1457_v1 = vld [vmem:[#allocation6 + $0x8] sm:$0xff]  }
  0x27   :  { %1353 = vmatprep.subr.bf16.mxu0 %v1456_v0  ;;  %1433 = vmatprep.subr.bf16.mxu1 %v1456_v0  ;;  %v1458_v2 = vld [vmem:[#allocation6 + $0x10] sm:$0xff]   ;;  %v1459_v3 = vld [vmem:[#allocation6 + $0x18] sm:$0xff]   ;;  %v1464_v4 = vld [vmem:[#allocation3] sm:$0xff]  }
  0x28   :  { %1354 = vmatpush3.bf16.msra.mxu0 %v1456_v0  ;;  %1441 = vmatpush3.bf16.msra.mxu1 %v1456_v0  ;;  %v1465_v5 = vld [vmem:[#allocation3 + $0x80] sm:$0xff]   ;;  %v1461_v7 = vld [vmem:[#allocation6 + $0x28] sm:$0xff]   ;;  %v1462_v8 = vld [vmem:[#allocation6 + $0x30] sm:$0xff]  }
  0x29   :  { %1355 = vmatprep.subr.bf16.mxu0 %v1457_v1  ;;  %1434 = vmatprep.subr.bf16.mxu1 %v1457_v1  ;;  %v1460_v6 = vld [vmem:[#allocation6 + $0x20] sm:$0xff]   ;;  %v1463_v9 = vld [vmem:[#allocation6 + $0x38] sm:$0xff]   ;;  %v1466_v10 = vld [vmem:[#allocation3 + $0x8] sm:$0xff]  }
  0x2a   :  { %1369 = vmatprep.mubr.bf16.mxu0 %v1464_v4  ;;  %1401 = vmatprep.mubr.bf16.mxu1 %v1465_v5  ;;  %v1467_v11 = vld [vmem:[#allocation3 + $0x88] sm:$0xff]   ;;  %v1468_v12 = vld [vmem:[#allocation3 + $0x10] sm:$0xff]   ;;  %v1470_v14 = vld [vmem:[#allocation3 + $0x18] sm:$0xff]  }
  0x2b   :  { %v1469_v13 = vld [vmem:[#allocation3 + $0x90] sm:$0xff]   ;;  %v1471_v15 = vld [vmem:[#allocation3 + $0x98] sm:$0xff]   ;;  %v1472_v16 = vld [vmem:[#allocation3 + $0x20] sm:$0xff]  }
  0x2c   :  { %1356 = vmatpush3.bf16.msra.mxu0 %v1457_v1  ;;  %1442 = vmatpush3.bf16.msra.mxu1 %v1457_v1  ;;  %v1473_v17 = vld [vmem:[#allocation3 + $0xa0] sm:$0xff]   ;;  %v1474_v18 = vld [vmem:[#allocation3 + $0x28] sm:$0xff]   ;;  %v1476_v20 = vld [vmem:[#allocation3 + $0x30] sm:$0xff]  }
  0x2d   :  { %1357 = vmatprep.subr.bf16.mxu0 %v1458_v2  ;;  %1435 = vmatprep.subr.bf16.mxu1 %v1458_v2  ;;  %v1475_v19 = vld [vmem:[#allocation3 + $0xa8] sm:$0xff]   ;;  %v1477_v21 = vld [vmem:[#allocation3 + $0xb0] sm:$0xff]   ;;  %v1478_v22 = vld [vmem:[#allocation3 + $0x38] sm:$0xff]  }
  0x2e   :  { %v1479_v23 = vld [vmem:[#allocation3 + $0xb8] sm:$0xff]   ;;  %v1480_v24 = vld [vmem:[#allocation3 + $0x40] sm:$0xff]   ;;  %v1482_v26 = vld [vmem:[#allocation3 + $0x48] sm:$0xff]  }
  0x2f   :  { %v1481_v25 = vld [vmem:[#allocation3 + $0xc0] sm:$0xff]   ;;  %v1483_v27 = vld [vmem:[#allocation3 + $0xc8] sm:$0xff]   ;;  %v1484_v28 = vld [vmem:[#allocation3 + $0x50] sm:$0xff]  }
  0x30   :  { %1358 = vmatpush3.bf16.msra.mxu0 %v1458_v2  ;;  %1443 = vmatpush3.bf16.msra.mxu1 %v1458_v2  ;;  %v1485_v29 = vld [vmem:[#allocation3 + $0xd0] sm:$0xff]   ;;  %v1486_v30 = vld [vmem:[#allocation3 + $0x58] sm:$0xff]   ;;  %v1488_v32 = vld [vmem:[#allocation3 + $0x60] sm:$0xff]  }
  0x31   :  { %1359 = vmatprep.subr.bf16.mxu0 %v1459_v3  ;;  %1436 = vmatprep.subr.bf16.mxu1 %v1459_v3  ;;  %v1487_v31 = vld [vmem:[#allocation3 + $0xd8] sm:$0xff]   ;;  %v1489_v33 = vld [vmem:[#allocation3 + $0xe0] sm:$0xff]   ;;  %v1490_v34 = vld [vmem:[#allocation3 + $0x68] sm:$0xff]  }
  0x32   :  { %v1491_v35 = vld [vmem:[#allocation3 + $0xe8] sm:$0xff]   ;;  %v1492_v36 = vld [vmem:[#allocation3 + $0x70] sm:$0xff]   ;;  %v1494_v38 = vld [vmem:[#allocation3 + $0x78] sm:$0xff]  }
  0x33   :  { %v1493_v37 = vld [vmem:[#allocation3 + $0xf0] sm:$0xff]   ;;  %v1495_v39 = vld [vmem:[#allocation3 + $0xf8] sm:$0xff]   ;;  %v1627_v40 = vld [vmem:[%s1776_s2] ss:$0 sm:$0xff]  ;;  %s1572_s2 = smov [#allocation8]  }
  0x34   :  { %1360 = vmatpush3.bf16.msra.mxu0 %v1459_v3  ;;  %1444 = vmatpush3.bf16.msra.mxu1 %v1459_v3  ;;  %v1632_v42 = vld [vmem:[%s1777_s3] ss:$0 sm:$0xff]  ;;  %s1258_s3 = sshll.u32 %s1572_s2, 4  ;;  %s1259_s3 = int_to_ptr.vmem [resolvable:$true] %s1258_s3 }
  0x35   :  { %1361 = vmatprep.subr.bf16.mxu0 %v1460_v6  ;;  %1437 = vmatprep.subr.bf16.mxu1 %v1460_v6  ;;  %s1540_s17 = scalar_lea.vmem %s1259_s3, 8192  ;;  %p1545_p3 = scmp.lt.s32.totalorder %s1259_s3, %s1259_s3 }
  0x36   :  { %p1541_p2 = scmp.ne.s32.totalorder %s1259_s3, %s1540_s17  ;;  %p1546_p4 = scmp.lt.s32.totalorder %s1540_s17, %s1540_s17 }
  0x38   :  { %1362 = vmatpush3.bf16.msra.mxu0 %v1460_v6  ;;  %1445 = vmatpush3.bf16.msra.mxu1 %v1460_v6  ;;  %p1547_p5 = por %p1546_p4, %p1545_p3 }
  0x39   :  { %1363 = vmatprep.subr.bf16.mxu0 %v1461_v7  ;;  %1438 = vmatprep.subr.bf16.mxu1 %v1461_v7 }
  0x3a   :  { %p1548_p6 = pnand %p1547_p5, %p1541_p2 }
  0x3c   :  { %1364 = vmatpush3.bf16.msra.mxu0 %v1461_v7  ;;  %1446 = vmatpush3.bf16.msra.mxu1 %v1461_v7 }
  0x3d   :  { %1365 = vmatprep.subr.bf16.mxu0 %v1462_v8  ;;  %1439 = vmatprep.subr.bf16.mxu1 %v1462_v8 }
  0x40   :  { %1366 = vmatpush3.bf16.msra.mxu0 %v1462_v8  ;;  %1447 = vmatpush3.bf16.msra.mxu1 %v1462_v8 }
  0x41   :  { %1367 = vmatprep.subr.bf16.mxu0 %v1463_v9  ;;  %1440 = vmatprep.subr.bf16.mxu1 %v1463_v9 }
  0x44   :  { %1368 = vmatpush3.bf16.msra.mxu0 %v1463_v9  ;;  %1448 = vmatpush3.bf16.msra.mxu1 %v1463_v9 }
  0x47   :  { %1370 = vmatmul.mubr.bf16.vlgmr.msra.gmra.mrb[0].mxu0 %v1466_v10  ;;  %1402 = vmatmul.mubr.bf16.vlgmr.msra.gmra.mrb[0].mxu1 %v1467_v11 }
  0x48   :  { %1373 = vmatprep.mubr.bf16.mxu0 %v1468_v12  ;;  %1405 = vmatprep.mubr.bf16.mxu1 %v1469_v13 }
  0x4f   :  { %1374 = vmatmul.mubr.bf16.gmra.mrb[4].mxu0 %v1470_v14  ;;  %1406 = vmatmul.mubr.bf16.gmra.mrb[4].mxu1 %v1471_v15 }
  0x50   :  { %1377 = vmatprep.mubr.bf16.mxu0 %v1472_v16  ;;  %1409 = vmatprep.mubr.bf16.mxu1 %v1473_v17 }
  0x57   :  { %1378 = vmatmul.mubr.bf16.gmra.mrb[8].mxu0 %v1474_v18  ;;  %1410 = vmatmul.mubr.bf16.gmra.mrb[8].mxu1 %v1475_v19 }
  0x58   :  { %1381 = vmatprep.mubr.bf16.mxu0 %v1476_v20  ;;  %1413 = vmatprep.mubr.bf16.mxu1 %v1477_v21 }
  0x5f   :  { %1382 = vmatmul.mubr.bf16.gmra.mrb[12].mxu0 %v1478_v22  ;;  %1414 = vmatmul.mubr.bf16.gmra.mrb[12].mxu1 %v1479_v23 }
  0x60   :  { %1385 = vmatprep.mubr.bf16.mxu0 %v1480_v24  ;;  %1417 = vmatprep.mubr.bf16.mxu1 %v1481_v25 }
  0x67   :  { %1386 = vmatmul.mubr.bf16.gmra.mrb[16].mxu0 %v1482_v26  ;;  %1418 = vmatmul.mubr.bf16.gmra.mrb[16].mxu1 %v1483_v27 }
  0x68   :  { %1389 = vmatprep.mubr.bf16.mxu0 %v1484_v28  ;;  %1421 = vmatprep.mubr.bf16.mxu1 %v1485_v29 }
  0x6f   :  { %1390 = vmatmul.mubr.bf16.gmra.mrb[20].mxu0 %v1486_v30  ;;  %1422 = vmatmul.mubr.bf16.gmra.mrb[20].mxu1 %v1487_v31 }
  0x70   :  { %1393 = vmatprep.mubr.bf16.mxu0 %v1488_v32  ;;  %1425 = vmatprep.mubr.bf16.mxu1 %v1489_v33 }
  0x77   :  { %1394 = vmatmul.mubr.bf16.gmra.mrb[24].mxu0 %v1490_v34  ;;  %1426 = vmatmul.mubr.bf16.gmra.mrb[24].mxu1 %v1491_v35 }
  0x78   :  { %1397 = vmatprep.mubr.bf16.mxu0 %v1492_v36  ;;  %1429 = vmatprep.mubr.bf16.mxu1 %v1493_v37 }
  0x7f   :  { %1398 = vmatmul.mubr.bf16.gmra.mrb[28].mxu0 %v1494_v38  ;;  %1430 = vmatmul.mubr.bf16.gmra.mrb[28].mxu1 %v1495_v39 }
 0x11a   :  { %v1371_v41 = vpop.f32.mrb[0].mxu0  ;;  %v1403_v43 = vpop.f32.mrb[0].mxu1 }
 0x11b   :  { %v992_v44 = vmul.f32 %v1371_v41, %v1627_v40  ;;  %v1024_v45 = vmul.f32 %v1403_v43, %v1627_v40  ;;  %v533_v46 = vpop.f32.mrb[1].mxu0  ;;  %v661_v47 = vpop.f32.mrb[1].mxu1 }
 0x11c   :  { %v990_v48 = vmul.f32 %v1627_v40, %v533_v46  ;;  %v1022_v49 = vmul.f32 %v1627_v40, %v661_v47  ;;  %v1372_v50 = vpop.f32.mrb[2].mxu0  ;;  %v1404_v51 = vpop.f32.mrb[2].mxu1 }
 0x11d   :  { %v1063_v52 = vadd.f32 %v1632_v42, %v992_v44  ;;  %v1095_v53 = vadd.f32 %v1632_v42, %v1024_v45  ;;  %v993_v54 = vmul.f32 %v1372_v50, %v1627_v40  ;;  %v1025_v55 = vmul.f32 %v1404_v51, %v1627_v40  ;;  %v536_v56 = vpop.f32.mrb[3].mxu0  ;;  %v664_v57 = vpop.f32.mrb[3].mxu1 }
 0x11e   :  { %v1061_v58 = vadd.f32 %v1632_v42, %v990_v48  ;;  %v1093_v59 = vadd.f32 %v1632_v42, %v1022_v49  ;;  %v991_v60 = vmul.f32 %v1627_v40, %v536_v56  ;;  %v1023_v61 = vmul.f32 %v1627_v40, %v664_v57 }
 0x11f   :  { %v1127_v62 = vmax.f32 %v1063_v52, 0.0  ;;  %v1159_v63 = vmax.f32 %v1095_v53, 0.0  ;;  %v1064_v0 = vadd.f32 %v1632_v42, %v993_v54  ;;  %v1096_v1 = vadd.f32 %v1632_v42, %v1025_v55 }
 0x120   :  { %v1125_v2 = vmax.f32 %v1061_v58, 0.0  ;;  %v1157_v3 = vmax.f32 %v1093_v59, 0.0  ;;  %v1062_v4 = vadd.f32 %v1632_v42, %v991_v60  ;;  %v1094_v5 = vadd.f32 %v1632_v42, %v1023_v61 }
 0x121   :  { %1191 = vst [vmem:[#allocation8 + $0x10] sm:$0xff] %v1127_v62  ;;  %1223 = vst [vmem:[#allocation8 + $0x110] sm:$0xff] %v1159_v63  ;;  %v1128_v6 = vmax.f32 %v1064_v0, 0.0  ;;  %v1160_v7 = vmax.f32 %v1096_v1, 0.0 }
 0x122   :  { %1189 = vst [vmem:[#allocation8] sm:$0xff] %v1125_v2  ;;  %1221 = vst [vmem:[#allocation8 + $0x100] sm:$0xff] %v1157_v3  ;;  %v1126_v8 = vmax.f32 %v1062_v4, 0.0  ;;  %v1158_v9 = vmax.f32 %v1094_v5, 0.0  ;;  %v1375_v10 = vpop.f32.mrb[4].mxu0  ;;  %v1407_v11 = vpop.f32.mrb[4].mxu1 }
 0x123   :  { %1192 = vst [vmem:[#allocation8 + $0x18] sm:$0xff] %v1128_v6  ;;  %1224 = vst [vmem:[#allocation8 + $0x118] sm:$0xff] %v1160_v7  ;;  %v996_v12 = vmul.f32 %v1375_v10, %v1627_v40  ;;  %v1028_v13 = vmul.f32 %v1407_v11, %v1627_v40  ;;  %v549_v14 = vpop.f32.mrb[5].mxu0  ;;  %v677_v15 = vpop.f32.mrb[5].mxu1 }
 0x124   :  { %1190 = vst [vmem:[#allocation8 + $0x8] sm:$0xff] %v1126_v8  ;;  %1222 = vst [vmem:[#allocation8 + $0x108] sm:$0xff] %v1158_v9  ;;  %v994_v16 = vmul.f32 %v1627_v40, %v549_v14  ;;  %v1026_v17 = vmul.f32 %v1627_v40, %v677_v15  ;;  %v1376_v18 = vpop.f32.mrb[6].mxu0  ;;  %v1408_v19 = vpop.f32.mrb[6].mxu1 }
 0x125   :  { %v1067_v20 = vadd.f32 %v1632_v42, %v996_v12  ;;  %v1099_v21 = vadd.f32 %v1632_v42, %v1028_v13  ;;  %v997_v22 = vmul.f32 %v1376_v18, %v1627_v40  ;;  %v1029_v23 = vmul.f32 %v1408_v19, %v1627_v40  ;;  %v552_v24 = vpop.f32.mrb[7].mxu0  ;;  %v680_v25 = vpop.f32.mrb[7].mxu1 }
 0x126   :  { %v1065_v26 = vadd.f32 %v1632_v42, %v994_v16  ;;  %v1097_v27 = vadd.f32 %v1632_v42, %v1026_v17  ;;  %v995_v28 = vmul.f32 %v1627_v40, %v552_v24  ;;  %v1027_v29 = vmul.f32 %v1627_v40, %v680_v25 }
 0x127   :  { %v1131_v30 = vmax.f32 %v1067_v20, 0.0  ;;  %v1163_v31 = vmax.f32 %v1099_v21, 0.0  ;;  %v1068_v32 = vadd.f32 %v1632_v42, %v997_v22  ;;  %v1100_v33 = vadd.f32 %v1632_v42, %v1029_v23 }
 0x128   :  { %v1129_v34 = vmax.f32 %v1065_v26, 0.0  ;;  %v1161_v35 = vmax.f32 %v1097_v27, 0.0  ;;  %v1066_v36 = vadd.f32 %v1632_v42, %v995_v28  ;;  %v1098_v37 = vadd.f32 %v1632_v42, %v1027_v29 }
 0x129   :  { %1195 = vst [vmem:[#allocation8 + $0x30] sm:$0xff] %v1131_v30  ;;  %1227 = vst [vmem:[#allocation8 + $0x130] sm:$0xff] %v1163_v31  ;;  %v1132_v38 = vmax.f32 %v1068_v32, 0.0  ;;  %v1164_v39 = vmax.f32 %v1100_v33, 0.0 }
 0x12a   :  { %1193 = vst [vmem:[#allocation8 + $0x20] sm:$0xff] %v1129_v34  ;;  %1225 = vst [vmem:[#allocation8 + $0x120] sm:$0xff] %v1161_v35  ;;  %v1130_v41 = vmax.f32 %v1066_v36, 0.0  ;;  %v1162_v43 = vmax.f32 %v1098_v37, 0.0  ;;  %v1379_v44 = vpop.f32.mrb[8].mxu0  ;;  %v1411_v45 = vpop.f32.mrb[8].mxu1 }
 0x12b   :  { %1196 = vst [vmem:[#allocation8 + $0x38] sm:$0xff] %v1132_v38  ;;  %1228 = vst [vmem:[#allocation8 + $0x138] sm:$0xff] %v1164_v39  ;;  %v1000_v46 = vmul.f32 %v1379_v44, %v1627_v40  ;;  %v1032_v47 = vmul.f32 %v1411_v45, %v1627_v40  ;;  %v565_v48 = vpop.f32.mrb[9].mxu0  ;;  %v693_v49 = vpop.f32.mrb[9].mxu1 }
 0x12c   :  { %1194 = vst [vmem:[#allocation8 + $0x28] sm:$0xff] %v1130_v41  ;;  %1226 = vst [vmem:[#allocation8 + $0x128] sm:$0xff] %v1162_v43  ;;  %v998_v50 = vmul.f32 %v1627_v40, %v565_v48  ;;  %v1030_v51 = vmul.f32 %v1627_v40, %v693_v49  ;;  %v1380_v52 = vpop.f32.mrb[10].mxu0  ;;  %v1412_v53 = vpop.f32.mrb[10].mxu1 }
 0x12d   :  { %v1071_v54 = vadd.f32 %v1632_v42, %v1000_v46  ;;  %v1103_v55 = vadd.f32 %v1632_v42, %v1032_v47  ;;  %v1001_v56 = vmul.f32 %v1380_v52, %v1627_v40  ;;  %v1033_v57 = vmul.f32 %v1412_v53, %v1627_v40  ;;  %v568_v58 = vpop.f32.mrb[11].mxu0  ;;  %v696_v59 = vpop.f32.mrb[11].mxu1 }
 0x12e   :  { %v1069_v60 = vadd.f32 %v1632_v42, %v998_v50  ;;  %v1101_v61 = vadd.f32 %v1632_v42, %v1030_v51  ;;  %v999_v62 = vmul.f32 %v1627_v40, %v568_v58  ;;  %v1031_v63 = vmul.f32 %v1627_v40, %v696_v59 }
 0x12f   :  { %v1135_v0 = vmax.f32 %v1071_v54, 0.0  ;;  %v1167_v1 = vmax.f32 %v1103_v55, 0.0  ;;  %v1072_v2 = vadd.f32 %v1632_v42, %v1001_v56  ;;  %v1104_v3 = vadd.f32 %v1632_v42, %v1033_v57 }
 0x130   :  { %v1133_v4 = vmax.f32 %v1069_v60, 0.0  ;;  %v1165_v5 = vmax.f32 %v1101_v61, 0.0  ;;  %v1070_v6 = vadd.f32 %v1632_v42, %v999_v62  ;;  %v1102_v7 = vadd.f32 %v1632_v42, %v1031_v63 }
 0x131   :  { %1199 = vst [vmem:[#allocation8 + $0x50] sm:$0xff] %v1135_v0  ;;  %1231 = vst [vmem:[#allocation8 + $0x150] sm:$0xff] %v1167_v1  ;;  %v1136_v8 = vmax.f32 %v1072_v2, 0.0  ;;  %v1168_v9 = vmax.f32 %v1104_v3, 0.0 }
 0x132   :  { %1197 = vst [vmem:[#allocation8 + $0x40] sm:$0xff] %v1133_v4  ;;  %1229 = vst [vmem:[#allocation8 + $0x140] sm:$0xff] %v1165_v5  ;;  %v1134_v10 = vmax.f32 %v1070_v6, 0.0  ;;  %v1166_v11 = vmax.f32 %v1102_v7, 0.0  ;;  %v1383_v12 = vpop.f32.mrb[12].mxu0  ;;  %v1415_v13 = vpop.f32.mrb[12].mxu1 }
 0x133   :  { %1200 = vst [vmem:[#allocation8 + $0x58] sm:$0xff] %v1136_v8  ;;  %1232 = vst [vmem:[#allocation8 + $0x158] sm:$0xff] %v1168_v9  ;;  %v1004_v14 = vmul.f32 %v1383_v12, %v1627_v40  ;;  %v1036_v15 = vmul.f32 %v1415_v13, %v1627_v40  ;;  %v581_v16 = vpop.f32.mrb[13].mxu0  ;;  %v709_v17 = vpop.f32.mrb[13].mxu1 }
 0x134   :  { %1198 = vst [vmem:[#allocation8 + $0x48] sm:$0xff] %v1134_v10  ;;  %1230 = vst [vmem:[#allocation8 + $0x148] sm:$0xff] %v1166_v11  ;;  %v1002_v18 = vmul.f32 %v1627_v40, %v581_v16  ;;  %v1034_v19 = vmul.f32 %v1627_v40, %v709_v17  ;;  %v1384_v20 = vpop.f32.mrb[14].mxu0  ;;  %v1416_v21 = vpop.f32.mrb[14].mxu1 }
 0x135   :  { %v1075_v22 = vadd.f32 %v1632_v42, %v1004_v14  ;;  %v1107_v23 = vadd.f32 %v1632_v42, %v1036_v15  ;;  %v1005_v24 = vmul.f32 %v1384_v20, %v1627_v40  ;;  %v1037_v25 = vmul.f32 %v1416_v21, %v1627_v40  ;;  %v584_v26 = vpop.f32.mrb[15].mxu0  ;;  %v712_v27 = vpop.f32.mrb[15].mxu1 }
 0x136   :  { %v1073_v28 = vadd.f32 %v1632_v42, %v1002_v18  ;;  %v1105_v29 = vadd.f32 %v1632_v42, %v1034_v19  ;;  %v1003_v30 = vmul.f32 %v1627_v40, %v584_v26  ;;  %v1035_v31 = vmul.f32 %v1627_v40, %v712_v27 }
 0x137   :  { %v1139_v32 = vmax.f32 %v1075_v22, 0.0  ;;  %v1171_v33 = vmax.f32 %v1107_v23, 0.0  ;;  %v1076_v34 = vadd.f32 %v1632_v42, %v1005_v24  ;;  %v1108_v35 = vadd.f32 %v1632_v42, %v1037_v25 }
 0x138   :  { %v1137_v36 = vmax.f32 %v1073_v28, 0.0  ;;  %v1169_v37 = vmax.f32 %v1105_v29, 0.0  ;;  %v1074_v38 = vadd.f32 %v1632_v42, %v1003_v30  ;;  %v1106_v39 = vadd.f32 %v1632_v42, %v1035_v31 }
 0x139   :  { %1203 = vst [vmem:[#allocation8 + $0x70] sm:$0xff] %v1139_v32  ;;  %1235 = vst [vmem:[#allocation8 + $0x170] sm:$0xff] %v1171_v33  ;;  %v1140_v41 = vmax.f32 %v1076_v34, 0.0  ;;  %v1172_v43 = vmax.f32 %v1108_v35, 0.0 }
 0x13a   :  { %1201 = vst [vmem:[#allocation8 + $0x60] sm:$0xff] %v1137_v36  ;;  %1233 = vst [vmem:[#allocation8 + $0x160] sm:$0xff] %v1169_v37  ;;  %v1138_v44 = vmax.f32 %v1074_v38, 0.0  ;;  %v1170_v45 = vmax.f32 %v1106_v39, 0.0  ;;  %v1387_v46 = vpop.f32.mrb[16].mxu0  ;;  %v1419_v47 = vpop.f32.mrb[16].mxu1 }
 0x13b   :  { %1204 = vst [vmem:[#allocation8 + $0x78] sm:$0xff] %v1140_v41  ;;  %1236 = vst [vmem:[#allocation8 + $0x178] sm:$0xff] %v1172_v43  ;;  %v1008_v48 = vmul.f32 %v1387_v46, %v1627_v40  ;;  %v1040_v49 = vmul.f32 %v1419_v47, %v1627_v40  ;;  %v597_v50 = vpop.f32.mrb[17].mxu0  ;;  %v725_v51 = vpop.f32.mrb[17].mxu1 }
 0x13c   :  { %1202 = vst [vmem:[#allocation8 + $0x68] sm:$0xff] %v1138_v44  ;;  %1234 = vst [vmem:[#allocation8 + $0x168] sm:$0xff] %v1170_v45  ;;  %v1006_v52 = vmul.f32 %v1627_v40, %v597_v50  ;;  %v1038_v53 = vmul.f32 %v1627_v40, %v725_v51  ;;  %v1388_v54 = vpop.f32.mrb[18].mxu0  ;;  %v1420_v55 = vpop.f32.mrb[18].mxu1 }
 0x13d   :  { %v1079_v56 = vadd.f32 %v1632_v42, %v1008_v48  ;;  %v1111_v57 = vadd.f32 %v1632_v42, %v1040_v49  ;;  %v1009_v58 = vmul.f32 %v1388_v54, %v1627_v40  ;;  %v1041_v59 = vmul.f32 %v1420_v55, %v1627_v40  ;;  %v600_v60 = vpop.f32.mrb[19].mxu0  ;;  %v728_v61 = vpop.f32.mrb[19].mxu1 }
 0x13e   :  { %v1077_v62 = vadd.f32 %v1632_v42, %v1006_v52  ;;  %v1109_v63 = vadd.f32 %v1632_v42, %v1038_v53  ;;  %v1007_v0 = vmul.f32 %v1627_v40, %v600_v60  ;;  %v1039_v1 = vmul.f32 %v1627_v40, %v728_v61 }
 0x13f   :  { %v1143_v2 = vmax.f32 %v1079_v56, 0.0  ;;  %v1175_v3 = vmax.f32 %v1111_v57, 0.0  ;;  %v1080_v4 = vadd.f32 %v1632_v42, %v1009_v58  ;;  %v1112_v5 = vadd.f32 %v1632_v42, %v1041_v59 }
 0x140   :  { %v1141_v6 = vmax.f32 %v1077_v62, 0.0  ;;  %v1173_v7 = vmax.f32 %v1109_v63, 0.0  ;;  %v1078_v8 = vadd.f32 %v1632_v42, %v1007_v0  ;;  %v1110_v9 = vadd.f32 %v1632_v42, %v1039_v1 }
 0x141   :  { %1207 = vst [vmem:[#allocation8 + $0x90] sm:$0xff] %v1143_v2  ;;  %1239 = vst [vmem:[#allocation8 + $0x190] sm:$0xff] %v1175_v3  ;;  %v1144_v10 = vmax.f32 %v1080_v4, 0.0  ;;  %v1176_v11 = vmax.f32 %v1112_v5, 0.0 }
 0x142   :  { %1205 = vst [vmem:[#allocation8 + $0x80] sm:$0xff] %v1141_v6  ;;  %1237 = vst [vmem:[#allocation8 + $0x180] sm:$0xff] %v1173_v7  ;;  %v1142_v12 = vmax.f32 %v1078_v8, 0.0  ;;  %v1174_v13 = vmax.f32 %v1110_v9, 0.0  ;;  %v1391_v14 = vpop.f32.mrb[20].mxu0  ;;  %v1423_v15 = vpop.f32.mrb[20].mxu1 }
 0x143   :  { %1208 = vst [vmem:[#allocation8 + $0x98] sm:$0xff] %v1144_v10  ;;  %1240 = vst [vmem:[#allocation8 + $0x198] sm:$0xff] %v1176_v11  ;;  %v1012_v16 = vmul.f32 %v1391_v14, %v1627_v40  ;;  %v1044_v17 = vmul.f32 %v1423_v15, %v1627_v40  ;;  %v613_v18 = vpop.f32.mrb[21].mxu0  ;;  %v741_v19 = vpop.f32.mrb[21].mxu1 }
 0x144   :  { %1206 = vst [vmem:[#allocation8 + $0x88] sm:$0xff] %v1142_v12  ;;  %1238 = vst [vmem:[#allocation8 + $0x188] sm:$0xff] %v1174_v13  ;;  %v1010_v20 = vmul.f32 %v1627_v40, %v613_v18  ;;  %v1042_v21 = vmul.f32 %v1627_v40, %v741_v19  ;;  %v1392_v22 = vpop.f32.mrb[22].mxu0  ;;  %v1424_v23 = vpop.f32.mrb[22].mxu1 }
 0x145   :  { %v1083_v24 = vadd.f32 %v1632_v42, %v1012_v16  ;;  %v1115_v25 = vadd.f32 %v1632_v42, %v1044_v17  ;;  %v1013_v26 = vmul.f32 %v1392_v22, %v1627_v40  ;;  %v1045_v27 = vmul.f32 %v1424_v23, %v1627_v40  ;;  %v616_v28 = vpop.f32.mrb[23].mxu0  ;;  %v744_v29 = vpop.f32.mrb[23].mxu1 }
 0x146   :  { %v1081_v30 = vadd.f32 %v1632_v42, %v1010_v20  ;;  %v1113_v31 = vadd.f32 %v1632_v42, %v1042_v21  ;;  %v1011_v32 = vmul.f32 %v1627_v40, %v616_v28  ;;  %v1043_v33 = vmul.f32 %v1627_v40, %v744_v29 }
 0x147   :  { %v1147_v34 = vmax.f32 %v1083_v24, 0.0  ;;  %v1179_v35 = vmax.f32 %v1115_v25, 0.0  ;;  %v1084_v36 = vadd.f32 %v1632_v42, %v1013_v26  ;;  %v1116_v37 = vadd.f32 %v1632_v42, %v1045_v27 }
 0x148   :  { %v1145_v38 = vmax.f32 %v1081_v30, 0.0  ;;  %v1177_v39 = vmax.f32 %v1113_v31, 0.0  ;;  %v1082_v41 = vadd.f32 %v1632_v42, %v1011_v32  ;;  %v1114_v43 = vadd.f32 %v1632_v42, %v1043_v33 }
 0x149   :  { %1211 = vst [vmem:[#allocation8 + $0xb0] sm:$0xff] %v1147_v34  ;;  %1243 = vst [vmem:[#allocation8 + $0x1b0] sm:$0xff] %v1179_v35  ;;  %v1148_v44 = vmax.f32 %v1084_v36, 0.0  ;;  %v1180_v45 = vmax.f32 %v1116_v37, 0.0 }
 0x14a   :  { %1209 = vst [vmem:[#allocation8 + $0xa0] sm:$0xff] %v1145_v38  ;;  %1241 = vst [vmem:[#allocation8 + $0x1a0] sm:$0xff] %v1177_v39  ;;  %v1146_v46 = vmax.f32 %v1082_v41, 0.0  ;;  %v1178_v47 = vmax.f32 %v1114_v43, 0.0  ;;  %v1395_v48 = vpop.f32.mrb[24].mxu0  ;;  %v1427_v49 = vpop.f32.mrb[24].mxu1 }
 0x14b   :  { %1212 = vst [vmem:[#allocation8 + $0xb8] sm:$0xff] %v1148_v44  ;;  %1244 = vst [vmem:[#allocation8 + $0x1b8] sm:$0xff] %v1180_v45  ;;  %v1016_v50 = vmul.f32 %v1395_v48, %v1627_v40  ;;  %v1048_v51 = vmul.f32 %v1427_v49, %v1627_v40  ;;  %v629_v52 = vpop.f32.mrb[25].mxu0  ;;  %v757_v53 = vpop.f32.mrb[25].mxu1 }
 0x14c   :  { %1210 = vst [vmem:[#allocation8 + $0xa8] sm:$0xff] %v1146_v46  ;;  %1242 = vst [vmem:[#allocation8 + $0x1a8] sm:$0xff] %v1178_v47  ;;  %v1014_v54 = vmul.f32 %v1627_v40, %v629_v52  ;;  %v1046_v55 = vmul.f32 %v1627_v40, %v757_v53  ;;  %v1396_v56 = vpop.f32.mrb[26].mxu0  ;;  %v1428_v57 = vpop.f32.mrb[26].mxu1 }
 0x14d   :  { %v1087_v58 = vadd.f32 %v1632_v42, %v1016_v50  ;;  %v1119_v59 = vadd.f32 %v1632_v42, %v1048_v51  ;;  %v1017_v60 = vmul.f32 %v1396_v56, %v1627_v40  ;;  %v1049_v61 = vmul.f32 %v1428_v57, %v1627_v40  ;;  %v632_v62 = vpop.f32.mrb[27].mxu0  ;;  %v760_v63 = vpop.f32.mrb[27].mxu1 }
 0x14e   :  { %v1085_v0 = vadd.f32 %v1632_v42, %v1014_v54  ;;  %v1117_v1 = vadd.f32 %v1632_v42, %v1046_v55  ;;  %v1015_v2 = vmul.f32 %v1627_v40, %v632_v62  ;;  %v1047_v3 = vmul.f32 %v1627_v40, %v760_v63 }
 0x14f   :  { %v1151_v4 = vmax.f32 %v1087_v58, 0.0  ;;  %v1183_v5 = vmax.f32 %v1119_v59, 0.0  ;;  %v1088_v6 = vadd.f32 %v1632_v42, %v1017_v60  ;;  %v1120_v7 = vadd.f32 %v1632_v42, %v1049_v61 }
 0x150   :  { %v1149_v8 = vmax.f32 %v1085_v0, 0.0  ;;  %v1181_v9 = vmax.f32 %v1117_v1, 0.0  ;;  %v1086_v10 = vadd.f32 %v1632_v42, %v1015_v2  ;;  %v1118_v11 = vadd.f32 %v1632_v42, %v1047_v3 }
 0x151   :  { %1215 = vst [vmem:[#allocation8 + $0xd0] sm:$0xff] %v1151_v4  ;;  %1247 = vst [vmem:[#allocation8 + $0x1d0] sm:$0xff] %v1183_v5  ;;  %v1152_v12 = vmax.f32 %v1088_v6, 0.0  ;;  %v1184_v13 = vmax.f32 %v1120_v7, 0.0 }
 0x152   :  { %1213 = vst [vmem:[#allocation8 + $0xc0] sm:$0xff] %v1149_v8  ;;  %1245 = vst [vmem:[#allocation8 + $0x1c0] sm:$0xff] %v1181_v9  ;;  %v1150_v14 = vmax.f32 %v1086_v10, 0.0  ;;  %v1182_v15 = vmax.f32 %v1118_v11, 0.0  ;;  %v1399_v16 = vpop.f32.mrb[28].mxu0  ;;  %v1431_v17 = vpop.f32.mrb[28].mxu1 }
 0x153   :  { %1216 = vst [vmem:[#allocation8 + $0xd8] sm:$0xff] %v1152_v12  ;;  %1248 = vst [vmem:[#allocation8 + $0x1d8] sm:$0xff] %v1184_v13  ;;  %v1020_v18 = vmul.f32 %v1399_v16, %v1627_v40  ;;  %v1052_v19 = vmul.f32 %v1431_v17, %v1627_v40  ;;  %v645_v20 = vpop.f32.mrb[29].mxu0  ;;  %v773_v21 = vpop.f32.mrb[29].mxu1 }
 0x154   :  { %1214 = vst [vmem:[#allocation8 + $0xc8] sm:$0xff] %v1150_v14  ;;  %1246 = vst [vmem:[#allocation8 + $0x1c8] sm:$0xff] %v1182_v15  ;;  %v1018_v22 = vmul.f32 %v1627_v40, %v645_v20  ;;  %v1050_v23 = vmul.f32 %v1627_v40, %v773_v21  ;;  %v1400_v24 = vpop.f32.mrb[30].mxu0  ;;  %v1432_v25 = vpop.f32.mrb[30].mxu1 }
 0x155   :  { %v1091_v26 = vadd.f32 %v1632_v42, %v1020_v18  ;;  %v1123_v27 = vadd.f32 %v1632_v42, %v1052_v19  ;;  %v1021_v28 = vmul.f32 %v1400_v24, %v1627_v40  ;;  %v1053_v29 = vmul.f32 %v1432_v25, %v1627_v40  ;;  %v648_v30 = vpop.f32.mrb[31].mxu0  ;;  %v776_v31 = vpop.f32.mrb[31].mxu1 }
 0x156   :  { %v1089_v32 = vadd.f32 %v1632_v42, %v1018_v22  ;;  %v1121_v33 = vadd.f32 %v1632_v42, %v1050_v23  ;;  %v1019_v34 = vmul.f32 %v1627_v40, %v648_v30  ;;  %v1051_v35 = vmul.f32 %v1627_v40, %v776_v31 }
 0x157   :  { %v1155_v36 = vmax.f32 %v1091_v26, 0.0  ;;  %v1187_v37 = vmax.f32 %v1123_v27, 0.0  ;;  %v1092_v38 = vadd.f32 %v1632_v42, %v1021_v28  ;;  %v1124_v39 = vadd.f32 %v1632_v42, %v1053_v29 }
 0x158   :  { %v1153_v41 = vmax.f32 %v1089_v32, 0.0  ;;  %v1185_v43 = vmax.f32 %v1121_v33, 0.0  ;;  %v1090_v44 = vadd.f32 %v1632_v42, %v1019_v34  ;;  %v1122_v45 = vadd.f32 %v1632_v42, %v1051_v35 }
 0x159   :  { %1219 = vst [vmem:[#allocation8 + $0xf0] sm:$0xff] %v1155_v36  ;;  %1251 = vst [vmem:[#allocation8 + $0x1f0] sm:$0xff] %v1187_v37  ;;  %v1156_v46 = vmax.f32 %v1092_v38, 0.0  ;;  %v1188_v47 = vmax.f32 %v1124_v39, 0.0 }
 0x15a   :  { %1217 = vst [vmem:[#allocation8 + $0xe0] sm:$0xff] %v1153_v41  ;;  %1249 = vst [vmem:[#allocation8 + $0x1e0] sm:$0xff] %v1185_v43  ;;  %v1154_v40 = vmax.f32 %v1090_v44, 0.0  ;;  %v1186_v48 = vmax.f32 %v1122_v45, 0.0 }
 0x15b   :  { %1220 = vst [vmem:[#allocation8 + $0xf8] sm:$0xff] %v1156_v46  ;;  %1252 = vst [vmem:[#allocation8 + $0x1f8] sm:$0xff] %v1188_v47 }
 0x15c   :  { %1218 = vst [vmem:[#allocation8 + $0xe8] sm:$0xff] %v1154_v40  ;;  %1250 = vst [vmem:[#allocation8 + $0x1e8] sm:$0xff] %v1186_v48 }
 0x15d   :  { %1551 = shalt.err (!%p1548_p6)
}
 0x15e   :  { %s1552_s20 = scalar_lea.hbm %s1778_s4, 8192 }
 0x15f   :  { %p1553_p7 = scmp.ne.s32.totalorder %s1778_s4, %s1552_s20  ;;  %p1556_p8 = scmp.lt.u32.totalorder %s1552_s20, %s1778_s4 }
 0x161   :  { %p1558_p9 = pnand %p1556_p8, %p1553_p7 }
 0x163   :  { %1561 = shalt.err (!%p1558_p9)
}
 0x164   :  { %s1573_s25 = smov 128   ;;  %s1574_s26 = smov 8  }
 0x165   :  { %1264 = dma.vmem_to_hbm [thread:$0]  %s1259_s3, 8192, %s1778_s4, [#allocation5], %s1573_s25, %s1573_s25, %s1574_s26  }
 0x166   :  { %1566 = dma.done.wait [#allocation5], 8192  }
 0x167   :  { %1567 = vsyncadd [#allocation5], 4294959104 }
 0x168   :  { %1268 = vsyncpa [#allocation4], 1 }
 0x169   :  { %1269 = vsyncpa [#allocation7], 1 }
 0x16a   :  { %1270 = vsyncpa [#allocation5], 1 }

</bundles_post_ra>
